<compile_context>
chip_gen: v5e
topology: v5e:2x2
jax: 0.10.0
libtpu: 0.0.40
codegen_flags: <defaults>
</compile_context>

<pallas_src>
import jax
import jax.numpy as jnp
from jax import lax
from jax.experimental import pallas as pl
from jax.experimental.pallas import tpu as pltpu

EPS = 1e-12  # torch.nn.functional.normalize default eps


def _round_up(a: int, m: int) -> int:
    return ((a + m - 1) // m) * m


def _normalize_linear_kernel(x_ref, w_ref, b_ref, o_ref, acc_ref):
    """grid = (batch blocks, K blocks); K is the reduction axis (last)."""
    k = pl.program_id(1)

    @pl.when(k == 0)
    def _():
        acc_ref[...] = jnp.zeros_like(acc_ref)

    # Backbone linear layer on the MXU, f32 accumulation.
    acc_ref[...] += jnp.dot(
        x_ref[...], w_ref[...], preferred_element_type=jnp.float32
    )

    @pl.when(k == pl.num_programs(1) - 1)
    def _():
        # Epilogue entirely in f32.
        y = acc_ref[...] + b_ref[...]                       # (TM, Dp) + (1, Dp)
        sq = jnp.sum(y * y, axis=1, keepdims=True)
        # max(sqrt(s), eps) == sqrt(max(s, eps^2)); rsqrt runs on the EUP.
        inv = lax.rsqrt(jnp.maximum(sq, EPS * EPS))
        o_ref[...] = (y * inv).astype(o_ref.dtype)


def model_with_normalize(
    x, w, b, *, tm: int = 256, tk: int = 512,
    compute_dtype=jnp.bfloat16, out_dtype=jnp.float32,
):
    """x: [B, F], w: [F, D], b: [D]  ->  L2-normalized embeddings [B, D]."""
    B, F = x.shape
    Fw, D = w.shape
    assert F == Fw and b.shape == (D,)

    # Tile sizes: multiples of 8 / 128, clamped to the (padded) problem size.
    TM = min(tm, _round_up(B, 8))
    TK = min(tk, _round_up(F, 128))
    B_pad = _round_up(B, TM)
    F_pad = _round_up(F, TK)
    D_pad = _round_up(D, 128)  # lane-dense output (no masked vst.msk stores)

    # Zero padding is exact: padded rows are dropped, padded K contributes 0
    # to the dot, padded D columns are 0 and contribute 0 to the row norm.
    xp = jnp.zeros((B_pad, F_pad), compute_dtype).at[:B, :F].set(
        x.astype(compute_dtype))
    wp = jnp.zeros((F_pad, D_pad), compute_dtype).at[:F, :D].set(
        w.astype(compute_dtype))
    bp = jnp.zeros((1, D_pad), jnp.float32).at[0, :D].set(
        b.astype(jnp.float32))

    grid = (B_pad // TM, F_pad // TK)

    # VMEM budget: double-buffered x/w/out blocks + f32 accumulator + bias.
    in_bpe = jnp.dtype(compute_dtype).itemsize
    out_bpe = jnp.dtype(out_dtype).itemsize
    est = (2 * (TM * TK * in_bpe + TK * D_pad * in_bpe + TM * D_pad * out_bpe)
           + TM * D_pad * 4 + 2 * D_pad * 4)
    vmem_limit = int(max(32 << 20, min(64 << 20, 2 * est)))  # cap for v7x 64 MiB

    out = pl.pallas_call(
        _normalize_linear_kernel,
        out_shape=jax.ShapeDtypeStruct((B_pad, D_pad), out_dtype),
        grid=grid,
        in_specs=[
            pl.BlockSpec((TM, TK), lambda i, k: (i, k)),      # x row/K block
            pl.BlockSpec((TK, D_pad), lambda i, k: (k, 0)),   # w K block (resident over i)
            pl.BlockSpec((1, D_pad), lambda i, k: (0, 0)),    # bias, DMA'd once
        ],
        out_specs=pl.BlockSpec((TM, D_pad), lambda i, k: (i, 0)),
        scratch_shapes=[pltpu.VMEM((TM, D_pad), jnp.float32)],
        compiler_params=pltpu.CompilerParams(
            dimension_semantics=("parallel", "arbitrary"),
            vmem_limit_bytes=vmem_limit,
        ),
    )(xp, wp, bp)

    return out[:B, :D]


def _reference(x, w, b):
    y = x @ w + b[None, :]
    n = jnp.maximum(jnp.sqrt(jnp.sum(y * y, axis=1, keepdims=True)), EPS)
    return y / n


if __name__ == "__main__":
    key = jax.random.PRNGKey(0)
    kx, kw, kb = jax.random.split(key, 3)

    B, F, D = 8, 32, 64  # small encoder->embedding shapes
    x = jax.random.normal(kx, (B, F), dtype=jnp.float32)
    w = jax.random.normal(kw, (F, D), dtype=jnp.float32) * 0.02
    b = jax.random.normal(kb, (D,), dtype=jnp.float32) * 0.01

    out = model_with_normalize(x, w, b)
    jax.block_until_ready(out)
    assert out.shape == (B, D)

    # Reference with matching bf16-cast operands (kernel accumulates in f32).
    xb = x.astype(jnp.bfloat16).astype(jnp.float32)
    wb = w.astype(jnp.bfloat16).astype(jnp.float32)
    ref_bf = _reference(xb, wb, b)
    assert jnp.allclose(out, ref_bf, atol=1e-4, rtol=1e-4), float(
        jnp.max(jnp.abs(out - ref_bf)))

    # Full-precision reference: bf16 input rounding bounds the error (~4e-3 rel).
    ref_f32 = _reference(x, w, b)
    assert jnp.allclose(out, ref_f32, atol=3e-2, rtol=3e-2)

    # Output rows have unit L2 norm (division done in f32).
    assert jnp.allclose(jnp.linalg.norm(out, axis=1), 1.0, atol=1e-5)

    # TODO(synk): the real backbone `self.model` is an arbitrary nn.Module; a
    # fused linear feature extractor stands in for it here.
    print("KERNEL_OK")
</pallas_src>

<mosaic_0001>
module attributes {stable_mosaic.version = 11 : i64} {
  func.func @_normalize_linear_kernel(%arg0: i32, %arg1: i32, %arg2: memref<8x128xbf16, #tpu.memory_space<vmem>>, %arg3: memref<128x128xbf16, #tpu.memory_space<vmem>>, %arg4: memref<1x128xf32, #tpu.memory_space<vmem>>, %arg5: memref<8x128xf32, #tpu.memory_space<vmem>>, %arg6: memref<8x128xf32, #tpu.memory_space<vmem>>) attributes {dimension_semantics = [#tpu.dimension_semantics<parallel>, #tpu.dimension_semantics<arbitrary>], iteration_bounds = array<i64: 1, 1>, scalar_prefetch = 0 : i64, scratch_operands = 1 : i64, tpu.core_type = #tpu.core_type<tc>, window_params = [{transform_indices = @transform_0, window_bounds = array<i64: 8, 128>}, {transform_indices = @transform_1, window_bounds = array<i64: 128, 128>}, {pipeline_mode = #tpu.pipeline_mode<synchronous>, transform_indices = @transform_2, window_bounds = array<i64: 1, 128>}, {transform_indices = @transform_3, window_bounds = array<i64: 8, 128>}]} {
    %c0_i32 = arith.constant 0 : i32
    %0 = arith.cmpi eq, %arg1, %c0_i32 : i32
    %1 = arith.extui %0 : i1 to i32
    %c0_i32_0 = arith.constant 0 : i32
    %2 = arith.cmpi ne, %1, %c0_i32_0 : i32
    scf.if %2 {
      %cst_10 = arith.constant 0.000000e+00 : f32
      %12 = vector.broadcast %cst_10 : f32 to vector<8x128xf32>
      %c0_11 = arith.constant 0 : index
      %c0_12 = arith.constant 0 : index
      %13 = vector.load %arg6[%c0_11, %c0_12] : memref<8x128xf32, #tpu.memory_space<vmem>>, vector<8x128xf32>
      tpu.vector_store %arg6[%c0_11, %c0_12], %12 {strides = array<i32>} : memref<8x128xf32, #tpu.memory_space<vmem>>, vector<8x128xf32>,
    } else {
    }
    %c0 = arith.constant 0 : index
    %c0_1 = arith.constant 0 : index
    %3 = vector.load %arg6[%c0, %c0_1] : memref<8x128xf32, #tpu.memory_space<vmem>>, vector<8x128xf32>
    %c0_2 = arith.constant 0 : index
    %c0_3 = arith.constant 0 : index
    %4 = vector.load %arg2[%c0_2, %c0_3] : memref<8x128xbf16, #tpu.memory_space<vmem>>, vector<8x128xbf16>
    %c0_4 = arith.constant 0 : index
    %c0_5 = arith.constant 0 : index
    %5 = vector.load %arg3[%c0_4, %c0_5] : memref<128x128xbf16, #tpu.memory_space<vmem>>, vector<128x128xbf16>
    %cst = arith.constant dense<0.000000e+00> : vector<8x128xf32>
    %6 = tpu.matmul %4, %5, %cst {dimension_numbers = #tpu.dot_dimension_numbers<[1], [0], [0], [1], [0, 0, 1, 1], [], []>} : vector<8x128xbf16>, vector<128x128xbf16>, vector<8x128xf32> -> vector<8x128xf32>
    %7 = arith.addf %3, %6 : vector<8x128xf32>
    %c0_6 = arith.constant 0 : index
    %c0_7 = arith.constant 0 : index
    %8 = vector.load %arg6[%c0_6, %c0_7] : memref<8x128xf32, #tpu.memory_space<vmem>>, vector<8x128xf32>
    tpu.vector_store %arg6[%c0_6, %c0_7], %7 {strides = array<i32>} : memref<8x128xf32, #tpu.memory_space<vmem>>, vector<8x128xf32>,
    %c0_i32_8 = arith.constant 0 : i32
    %9 = arith.cmpi eq, %arg1, %c0_i32_8 : i32
    %10 = arith.extui %9 : i1 to i32
    %c0_i32_9 = arith.constant 0 : i32
    %11 = arith.cmpi ne, %10, %c0_i32_9 : i32
    scf.if %11 {
      %c0_10 = arith.constant 0 : index
      %c0_11 = arith.constant 0 : index
      %12 = vector.load %arg6[%c0_10, %c0_11] : memref<8x128xf32, #tpu.memory_space<vmem>>, vector<8x128xf32>
      %c0_12 = arith.constant 0 : index
      %c0_13 = arith.constant 0 : index
      %13 = vector.load %arg4[%c0_12, %c0_13] : memref<1x128xf32, #tpu.memory_space<vmem>>, vector<1x128xf32>
      %14 = vector.broadcast %13 : vector<1x128xf32> to vector<8x128xf32>
      %15 = arith.addf %12, %14 : vector<8x128xf32>
      %16 = arith.mulf %15, %15 : vector<8x128xf32>
      %cst_14 = arith.constant dense<0.000000e+00> : vector<8xf32>
      %17 = vector.multi_reduction <add>, %16, %cst_14 [1] : vector<8x128xf32> to vector<8xf32>
      %18 = vector.shape_cast %17 : vector<8xf32> to vector<8x1xf32>
      %cst_15 = arith.constant 1.000000e-24 : f32
      %19 = vector.broadcast %cst_15 : f32 to vector<8x1xf32>
      %20 = arith.maximumf %18, %19 : vector<8x1xf32>
      %21 = math.rsqrt %20 : vector<8x1xf32>
      %22 = vector.broadcast %21 : vector<8x1xf32> to vector<8x128xf32>
      %23 = arith.mulf %15, %22 : vector<8x128xf32>
      %c0_16 = arith.constant 0 : index
      %c0_17 = arith.constant 0 : index
      %24 = vector.load %arg5[%c0_16, %c0_17] : memref<8x128xf32, #tpu.memory_space<vmem>>, vector<8x128xf32>
      tpu.vector_store %arg5[%c0_16, %c0_17], %23 {strides = array<i32>} : memref<8x128xf32, #tpu.memory_space<vmem>>, vector<8x128xf32>,
    } else {
    }
    return
  }
  func.func @transform_0(%arg0: i32, %arg1: i32) -> (i32, i32) {
    %c0_i32 = arith.constant 0 : i32
    return %arg0, %arg1 : i32, i32
  }
  func.func @transform_1(%arg0: i32, %arg1: i32) -> (i32, i32) {
    %c0_i32 = arith.constant 0 : i32
    %c0_i32_0 = arith.constant 0 : i32
    return %arg1, %c0_i32 : i32, i32
  }
  func.func @transform_2(%arg0: i32, %arg1: i32) -> (i32, i32) {
    %c0_i32 = arith.constant 0 : i32
    %c0_i32_0 = arith.constant 0 : i32
    %c0_i32_1 = arith.constant 0 : i32
    return %c0_i32, %c0_i32_0 : i32, i32
  }
  func.func @transform_3(%arg0: i32, %arg1: i32) -> (i32, i32) {
    %c0_i32 = arith.constant 0 : i32
    %c0_i32_0 = arith.constant 0 : i32
    return %arg0, %c0_i32 : i32, i32
  }
}

</mosaic_0001>

<bundles_post_ra>
// kernel: tpu_custom_call.1
= control target key start
LH: loop header
LB: loop body
LE: loop exit
PB: predicated region body
PF: predicated region fallthrough
CT: control target
= control target key end

     0   :  { %8 = vsyncpa [#allocation4], 0  ;;  %s337_s0 = inlined_call_operand.hbm [shape: bf16[8,128], index: 0, kind: input, shape index: {}]   ;;  %s338_s1 = inlined_call_operand.hbm [shape: bf16[128,128], index: 1, kind: input, shape index: {}]   ;;  %s339_s2 = inlined_call_operand.vmem [shape: f32[1,128], index: 2, kind: input, shape index: {}]   ;;  %s340_s3 = inlined_call_operand.hbm [shape: f32[8,128], index: 3, kind: output, shape index: {}]  }
   0x1   :  { %9 = vsyncpa [#allocation7], 0 }
   0x2   :  { %10 = vsyncpa [#allocation5], 0  ;;  %s16_s14 = sshll.u32 %s337_s0, 4  ;;  %s300_s15 = smov [#allocation3]   ;;  %s17_s14 = int_to_ptr.hbm [resolvable:$true] %s16_s14 }
   0x3   :  { %s18_s16 = sshll.u32 %s300_s15, 4  ;;  %s26_s19 = sshll.u32 %s338_s1, 4  ;;  %s19_s16 = int_to_ptr.vmem [resolvable:$true] %s18_s16  ;;  %s27_s19 = int_to_ptr.hbm [resolvable:$true] %s26_s19 }
   0x4   :  { %21 = dma.hbm_to_vmem [thread:$0]  %s17_s14, 64, %s19_s16, [#allocation4]  }
   0x5   :  { %s301_s20 = smov [#allocation6]   ;;  %s302_s22 = smov 64  }
   0x6   :  { %s28_s21 = sshll.u32 %s301_s20, 4  ;;  %s303_s23 = smov 4   ;;  %s29_s21 = int_to_ptr.vmem [resolvable:$true] %s28_s21 }
   0x7   :  { %34 = dma.hbm_to_vmem [thread:$0]  %s27_s19, 1024, %s29_s21, [#allocation7], %s302_s22, %s302_s22, %s303_s23  }
   0x8   :  { %294 = dma.done.wait [#allocation4], 64  }
   0x9   :  { %295 = vsyncadd [#allocation4], 4294967232 }
   0xa   :  { %296 = dma.done.wait [#allocation7], 1024  }
   0xb   :  { %297 = vsyncadd [#allocation7], 4294966272  ;;  %v213_v0 = vld [vmem:[#allocation6 + $0x38] sm:$0xff]  ;;  %v212_v1 = vld [vmem:[#allocation6 + $0x30] sm:$0xff]  ;;  %s304_s24 = smov [#allocation8]   ;;  %s163_s27 = sshll.u32 %s340_s3, 4  ;;  %s164_s27 = int_to_ptr.hbm [resolvable:$true] %s163_s27 }
   0xc   :  { %116 = vmatpush.bf16.msra.mxu0 %v213_v0  ;;  %v211_v2 = vld [vmem:[#allocation6 + $0x28] sm:$0xff]  ;;  %v210_v3 = vld [vmem:[#allocation6 + $0x20] sm:$0xff]  ;;  %v209_v4 = vld [vmem:[#allocation6 + $0x18] sm:$0xff]  ;;  %s161_s25 = sshll.u32 %s304_s24, 4  ;;  %s162_s25 = int_to_ptr.vmem [resolvable:$true] %s161_s25 }
   0xd   :  { %v208_v5 = vld [vmem:[#allocation6 + $0x10] sm:$0xff]  ;;  %v207_v6 = vld [vmem:[#allocation6 + $0x8] sm:$0xff]  ;;  %v206_v7 = vld [vmem:[#allocation6] sm:$0xff] }
   0xe   :  { %v51_v8 = vld [vmem:[#allocation3] sm:$0xf] }
   0xf   :  { %v219_v9 = vld [vmem:[%s339_s2] ss:$0 sm:$0xff] }
  0x10   :  { %117 = vmatpush.bf16.msra.mxu0 %v212_v1 }
  0x14   :  { %118 = vmatpush.bf16.msra.mxu0 %v211_v2 }
  0x18   :  { %119 = vmatpush.bf16.msra.mxu0 %v210_v3 }
  0x1c   :  { %120 = vmatpush.bf16.msra.mxu0 %v209_v4 }
  0x20   :  { %121 = vmatpush.bf16.msra.mxu0 %v208_v5 }
  0x24   :  { %122 = vmatpush.bf16.msra.mxu0 %v207_v6 }
  0x28   :  { %123 = vmatpush.bf16.msra.mxu0 %v206_v7 }
  0x2b   :  { %124 = vmatmul.bf16.vlgmr.msra.gmra.mxu0 %v51_v8 }
  0xa8   :  { %v125_v10 = vpop.f32.mrf.mxu0 }
  0xa9   :  { %v139_v11 = vadd.f32 %v219_v9, %v125_v10 }
  0xab   :  { %v140_v12 = vmul.f32 %v139_v11, %v139_v11 }
  0xad   :  { %141 = vadd.xlane.f32.xlu0 %v140_v12 }
  0xb0   :  { %v127_v13 = vpop.f32.mrf.mxu0 }
 0x120   :  { %v142_v14 = vpop.xlane.xlu0 %141 }
 0x121   :  { %v143_v15 = vmax.f32 %v142_v14, 1e-24 }
 0x123   :  { %220 = vrsqrt.f32 %v143_v15  ;;  %vm150_vm1 = vweird.f32 %v143_v15 }
 0x129   :  { %v221_v16 = vpop.eup %220 }
 0x12a   :  { %v145_v17 = vmul.f32 %v221_v16, %v143_v15  ;;  %vm151_vm0 = vweird.f32 %v221_v16 }
 0x12b   :  { %vm152_vm2 = vmor %vm150_vm1, %vm151_vm0 }
 0x12c   :  { %v146_v18 = vmul.f32 %v221_v16, %v145_v17 }
 0x12e   :  { %v147_v19 = vmul.f32 0.5, %v146_v18 }
 0x130   :  { %v148_v20 = vsub.f32 1.5, %v147_v19 }
 0x132   :  { %v149_v21 = vmul.f32 %v221_v16, %v148_v20 }
 0x134   :  { %v153_v22 = vsel %vm152_vm2, %v221_v16, %v149_v21 }
 0x135   :  { %v154_v23 = vmul.f32 %v153_v22, %v139_v11 }
 0x137   :  { %155 = vst [vmem:[#allocation8] sm:$0xff] %v154_v23 }
 0x138   :  { %166 = dma.vmem_to_hbm [thread:$0]  %s162_s25, 128, %s164_s27, [#allocation5]  }
 0x139   :  { %298 = dma.done.wait [#allocation5], 128  }
 0x13a   :  { %299 = vsyncadd [#allocation5], 4294967168 }
 0x13b   :  { %171 = vsyncpa [#allocation4], 1 }
 0x13c   :  { %172 = vsyncpa [#allocation7], 1 }
 0x13d   :  { %173 = vsyncpa [#allocation5], 1 }

</bundles_post_ra>
